<compile_context>
chip_gen: v7x
topology: tpu7x:2x2x1
jax: 0.10.0
libtpu: 0.0.40
codegen_flags: <defaults>
</compile_context>

<pallas_src>
import functools
import numpy as np
import jax
import jax.numpy as jnp
from jax.experimental import pallas as pl
from jax.experimental.pallas import tpu as pltpu

# ---- dynamics / quad_norm constants (same defaults as the torch module) ----
DT, ALPHA1, ALPHA2, BETA1, BETA2, D1, D2 = 0.05, 1.0, 1.0, 0.5, 0.5, 0.4, 0.5
EPSILON = 0.01
HIDDEN = 32


# ----------------------------------------------------------------------------
# __init__-time buffer construction (mirrors quad_norm.__init__; host-side,
# like torch's register_buffer).
# ----------------------------------------------------------------------------
def build_quadnorm_buffers(P_np):
    J0 = np.array(
        [[0.0, 1.0, 0.0, 0.0],
         [-(ALPHA1 + BETA1), -D1, BETA1, 0.0],
         [0.0, 0.0, 0.0, 1.0],
         [BETA2, 0.0, -(ALPHA2 + BETA2), -D2]], dtype=np.float32)
    A = (np.eye(4, dtype=np.float32) + np.float32(DT) * J0).astype(np.float32)
    ATP = (A.T @ P_np).astype(np.float32)
    Q = (A.T @ P_np @ A - P_np).astype(np.float64)
    r = float(np.float32(np.max(np.abs(np.linalg.eigvals(Q))) - EPSILON))
    P_norm = float(np.float32(np.linalg.norm(P_np.astype(np.float64), ord=2)))
    return A, ATP, r, P_norm


# ----------------------------------------------------------------------------
# Small constant matrices that push the elementwise algebra onto the MXU.
# ----------------------------------------------------------------------------
def build_kernel_constants(P_np, ATP_np):
    dt = np.float32(DT)
    a1, a2, b1, b2, d1, d2 = map(np.float32, (ALPHA1, ALPHA2, BETA1, BETA2, D1, D2))

    # Rows 0-3: trig arguments [x1; x3; x1-x3; 0].  Rows 4-7: I + dt*L (the
    # part of the Euler step that is linear in the state).
    C = np.array([[1, 0, 0, 0],
                  [0, 0, 1, 0],
                  [1, 0, -1, 0],
                  [0, 0, 0, 0]], dtype=np.float32)
    A_lin = np.array([[1, dt, 0, 0],
                      [0, 1 - dt * d1, 0, 0],
                      [0, 0, 1, dt],
                      [0, 0, 0, 1 - dt * d2]], dtype=np.float32)
    CA = np.concatenate([C, A_lin], axis=0)                       # (8, 4)

    # Nonlinear part of the Euler step, applied to [sin x1; sin x3; sin(x1-x3); 0].
    # Note sin(x3-x1) = -sin(x1-x3).
    Nd = (dt * np.array([[0, 0, 0, 0],
                         [-a1, 0, -b1, 0],
                         [0, 0, 0, 0],
                         [0, -a2, b2, 0]], dtype=np.float32))     # (4, 4)

    # d = [Dh10; Dh12; Dh30; Dh32] = M @ [1-cos x1; 1-cos x3; 1-cos(x1-x3); 0]
    M = (dt * np.array([[a1, 0, b1, 0],
                        [0, 0, -b1, 0],
                        [0, 0, -b2, 0],
                        [0, a2, b2, 0]], dtype=np.float32)).astype(np.float64)

    # ||ATP @ Dh||_F^2 = d^T S4 d  (only ATP columns 1 and 3 participate).
    atp1 = ATP_np[:, 1].astype(np.float64)
    atp3 = ATP_np[:, 3].astype(np.float64)
    s11 = np.dot(atp1, atp1)
    s13 = np.dot(atp1, atp3)
    s33 = np.dot(atp3, atp3)
    S4 = np.array([[s11, 0.0, s13, 0.0],
                   [0.0, s11, 0.0, s13],
                   [s13, 0.0, s33, 0.0],
                   [0.0, s13, 0.0, s33]], dtype=np.float64)
    G = np.concatenate([M, S4 @ M], axis=0).astype(np.float32)    # (8, 4): [d ; S4@d]

    return CA, Nd, G, P_np.astype(np.float32)


# ----------------------------------------------------------------------------
# Pallas kernel: the entire loss_nn.forward for one batch tile, batch-on-lanes.
# ----------------------------------------------------------------------------
def make_loss_nn_kernel(r, p_norm):
    r = float(r)
    p_norm = float(p_norm)

    def kernel(x_ref, ca_ref, nd_ref, g_ref, p_ref,
               w1_ref, b1_ref, w2_ref, b2_ref, w3_ref, b3_ref,
               out_ref, z_ref):
        T = x_ref.shape[1]                                        # TILE_B (static)
        x = x_ref[...]                                            # (4, T)

        # ---------------- dynamics (Euler step) — on the MXU ----------------
        lin = jnp.dot(ca_ref[...], x, preferred_element_type=jnp.float32)   # (8, T)
        t = lin[0:4, :]                     # [x1; x3; x1-x3; 0]
        sin_t = jnp.sin(t)                  # one dense EUP stream
        cos_t = jnp.cos(t)
        new_x = lin[4:8, :] + jnp.dot(nd_ref[...], sin_t,
                                      preferred_element_type=jnp.float32)   # (4, T)

        # ---------------- z = [x | new_x] via direct block stores -----------
        z_ref[:, :T] = x
        z_ref[:, T:] = new_x
        z = z_ref[...]                                            # (4, 2T)

        # ---------------- lyapunov MLP: ONE pass on [x | new_x] -------------
        h = jnp.tanh(jnp.dot(w1_ref[...], z,
                             preferred_element_type=jnp.float32) + b1_ref[...])
        h = jnp.tanh(jnp.dot(w2_ref[...], h,
                             preferred_element_type=jnp.float32) + b2_ref[...])
        V = jnp.dot(w3_ref[...], h,
                    preferred_element_type=jnp.float32) + b3_ref[...]       # (1, 2T)

        # ---------------- quadratic lyapunov z^T P z — on the MXU -----------
        Pz = jnp.dot(p_ref[...], z, preferred_element_type=jnp.float32)     # (4, 2T)
        Vq = jnp.sum(z * Pz, axis=0, keepdims=True)               # (1, 2T)

        # ---------------- quad_norm (sparse Dh quadratic) --------------------
        u = 1.0 - cos_t                                           # (4, T)
        e = jnp.dot(g_ref[...], u, preferred_element_type=jnp.float32)      # (8, T)
        d = e[0:4, :]                       # nonzero Dh entries
        sd = e[4:8, :]                      # S4 @ d
        dh_nsq = jnp.sum(d * d, axis=0, keepdims=True)            # ||Dh||_F^2
        atpdh_nsq = jnp.sum(d * sd, axis=0, keepdims=True)        # ||ATP@Dh||_F^2
        qn = r - (2.0 * jnp.sqrt(atpdh_nsq) + p_norm * dh_nsq)    # (1, T)

        # ---------------- outputs: direct row stores, no 9-way concat -------
        V_x, V_fx = V[:, :T], V[:, T:]
        Vq_x, Vq_fx = Vq[:, :T], Vq[:, T:]
        out_ref[0:1, :] = V_fx - V_x
        out_ref[1:2, :] = V_x
        out_ref[2:3, :] = Vq_x
        out_ref[3:4, :] = Vq_fx - Vq_x
        out_ref[4:5, :] = qn
        out_ref[5:9, :] = new_x

    return kernel


def _round_up(n, m):
    return ((n + m - 1) // m) * m


def loss_nn_forward(x, params, P, ATP, r, p_norm, tile_b=8192):
    """Full loss_nn forward; batch-tiled, (features, batch) layout inside.

    Meant to be wrapped in jax.jit together with its neighbours so the
    pad/transpose on either side fuse with surrounding XLA ops.
    """
    B = x.shape[0]
    w1, bb1, w2, bb2, w3, bb3 = params
    H = w1.shape[1]

    CA, Nd, G, Pc = build_kernel_constants(np.asarray(P), np.asarray(ATP))

    # Lane-dense tiling; cap the tile so the grid keeps >=2 steps (v7x has two
    # TensorCores and the grid axis is marked "parallel").
    padded = _round_up(B, 128)
    tile = min(int(tile_b), padded)
    if padded >= 256:
        tile = min(tile, padded // 2)
    tile = max(128, (tile // 128) * 128)
    padded = _round_up(padded, tile)
    grid = (padded // tile,)

    x_t = jnp.pad(x, ((0, padded - B), (0, 0))).T                 # (4, padded)

    kernel = make_loss_nn_kernel(r, p_norm)

    def const_spec(shape):
        return pl.BlockSpec(shape, lambda i: (0, 0))

    # Advisory cost estimate (helps XLA overlap the surrounding pad/transpose).
    flops = int(padded) * (4 * (4 * H + H * H + H) + 300)
    transcendentals = int(padded) * (4 + 4 + 4 * H + 1)
    bytes_accessed = int(padded) * (4 + 9) * 4 + 4 * (H * H + 3 * H + 200)

    out_t = pl.pallas_call(
        kernel,
        out_shape=jax.ShapeDtypeStruct((9, padded), jnp.float32),
        grid=grid,
        in_specs=[
            pl.BlockSpec((4, tile), lambda i: (0, i)),     # x tile (pipelined)
            const_spec((8, 4)),                            # [C ; I+dt*L]
            const_spec((4, 4)),                            # dt*N
            const_spec((8, 4)),                            # [M ; S4@M]
            const_spec((4, 4)),                            # P
            const_spec((H, 4)),                            # W1^T
            const_spec((H, 1)),                            # b1
            const_spec((H, H)),                            # W2^T
            const_spec((H, 1)),                            # b2
            const_spec((1, H)),                            # w3^T
            const_spec((1, 1)),                            # b3
        ],
        out_specs=pl.BlockSpec((9, tile), lambda i: (0, i)),
        scratch_shapes=[pltpu.VMEM((4, 2 * tile), jnp.float32)],   # z = [x | new_x]
        compiler_params=pltpu.CompilerParams(
            dimension_semantics=("parallel",),
            vmem_limit_bytes=48 * 1024 * 1024),
        cost_estimate=pl.CostEstimate(
            flops=flops, transcendentals=transcendentals,
            bytes_accessed=bytes_accessed),
    )(x_t, jnp.asarray(CA), jnp.asarray(Nd), jnp.asarray(G), jnp.asarray(Pc),
      w1.T, bb1.T, w2.T, bb2.T, w3.T, bb3)

    return out_t[:, :B].T                                         # (B, 9)


# ----------------------------------------------------------------------------
# Pure-JAX reference that mirrors the torch code literally (full 4x4 Dh + bmm).
# ----------------------------------------------------------------------------
def reference_forward(x, params, P, ATP, A, r, p_norm):
    w1, bb1, w2, bb2, w3, bb3 = params
    dt = DT
    x1, x2, x3, x4 = x[:, 0:1], x[:, 1:2], x[:, 2:3], x[:, 3:4]
    dx2 = -ALPHA1 * jnp.sin(x1) - BETA1 * jnp.sin(x1 - x3) - D1 * x2
    dx4 = -ALPHA2 * jnp.sin(x3) - BETA2 * jnp.sin(x3 - x1) - D2 * x4
    new_x = jnp.concatenate(
        [x1 + dt * x2, x2 + dt * dx2, x3 + dt * x4, x4 + dt * dx4], axis=1)

    def lyap(z):
        h = jnp.tanh(z @ w1 + bb1)
        h = jnp.tanh(h @ w2 + bb2)
        return h @ w3 + bb3

    def quad(z):
        return jnp.sum(z * (z @ P), axis=1, keepdims=True)

    V_x, V_fx = lyap(x), lyap(new_x)
    V_qx, V_qfx = quad(x), quad(new_x)

    z1, z3 = x[:, 0], x[:, 2]
    zero = jnp.zeros_like(z1)
    one = jnp.ones_like(z1)
    row0 = jnp.stack([zero, one, zero, zero], axis=1)
    row1 = jnp.stack([-ALPHA1 * jnp.cos(z1) - BETA1 * jnp.cos(z1 - z3),
                      -D1 * one, BETA1 * jnp.cos(z1 - z3), zero], axis=1)
    row2 = jnp.stack([zero, zero, zero, one], axis=1)
    row3 = jnp.stack([BETA2 * jnp.cos(z3 - z1), zero,
                      -ALPHA2 * jnp.cos(z3) - BETA2 * jnp.cos(z3 - z1),
                      -D2 * one], axis=1)
    J = jnp.stack([row0, row1, row2, row3], axis=1)
    Df = jnp.eye(4, dtype=x.dtype)[None] + dt * J
    Dh = Df - A[None]
    ATPDh = jnp.einsum('ij,bjk->bik', ATP, Dh)
    atpdh_nsq = jnp.sum(ATPDh * ATPDh, axis=(1, 2))
    dh_nsq = jnp.sum(Dh * Dh, axis=(1, 2))
    qn = (r - (2.0 * jnp.sqrt(atpdh_nsq) + p_norm * dh_nsq))[:, None]

    return jnp.concatenate(
        [V_fx - V_x, V_x, V_qx, V_qfx - V_qx, qn,
         new_x[:, 0:1], new_x[:, 1:2], new_x[:, 2:3], new_x[:, 3:4]], axis=1)


# ----------------------------------------------------------------------------
def init_lyapunov_params(key, hidden=HIDDEN):
    k1, k2, k3, k4, k5, k6 = jax.random.split(key, 6)
    w1 = 0.5 * jax.random.normal(k1, (4, hidden), jnp.float32)
    bb1 = 0.1 * jax.random.normal(k2, (1, hidden), jnp.float32)
    w2 = 0.3 * jax.random.normal(k3, (hidden, hidden), jnp.float32)
    bb2 = 0.1 * jax.random.normal(k4, (1, hidden), jnp.float32)
    w3 = 0.3 * jax.random.normal(k5, (hidden, 1), jnp.float32)
    bb3 = 0.1 * jax.random.normal(k6, (1, 1), jnp.float32)
    return (w1, bb1, w2, bb2, w3, bb3)


if __name__ == "__main__":
    key = jax.random.PRNGKey(0)
    kx, kw, kp, kx2 = jax.random.split(key, 4)

    params = init_lyapunov_params(kw)

    # Deterministic SPD matrix P (the quad_norm buffer).
    M = np.asarray(jax.random.normal(kp, (4, 4), jnp.float32))
    P_np = (M @ M.T + 0.5 * np.eye(4)).astype(np.float32)
    A_np, ATP_np, r, p_norm = build_quadnorm_buffers(P_np)

    P_j = jnp.asarray(P_np)
    A_j = jnp.asarray(A_np)
    ATP_j = jnp.asarray(ATP_np)

    # Jit the wrapper so the pad/transpose fuse with the custom call.
    fwd = jax.jit(lambda xx: loss_nn_forward(xx, params, P_np, ATP_np, r, p_norm))
    fwd_multi = jax.jit(lambda xx: loss_nn_forward(xx, params, P_np, ATP_np, r,
                                                   p_norm, tile_b=128))

    # --- small single-tile check -------------------------------------------
    B = 8
    x = jax.random.uniform(kx, (B, 4), jnp.float32, minval=-1.0, maxval=1.0)
    out = jax.block_until_ready(fwd(x))
    ref = jax.block_until_ready(reference_forward(x, params, P_j, ATP_j, A_j, r, p_norm))
    np.testing.assert_allclose(np.asarray(out), np.asarray(ref),
                               rtol=2e-3, atol=2e-3)
    assert out.shape == (B, 9)

    # --- multi-tile (pipelined, parallel grid) check ------------------------
    B2 = 260
    x2 = jax.random.uniform(kx2, (B2, 4), jnp.float32, minval=-1.0, maxval=1.0)
    out2 = jax.block_until_ready(fwd_multi(x2))
    ref2 = jax.block_until_ready(
        reference_forward(x2, params, P_j, ATP_j, A_j, r, p_norm))
    np.testing.assert_allclose(np.asarray(out2), np.asarray(ref2),
                               rtol=2e-3, atol=2e-3)
    assert out2.shape == (B2, 9)

    print("KERNEL_OK")
</pallas_src>

<mosaic_0001>
module attributes {stable_mosaic.version = 11 : i64} {
  func.func @kernel(%arg0: i32, %arg1: memref<4x128xf32, #tpu.memory_space<vmem>>, %arg2: memref<8x4xf32, #tpu.memory_space<vmem>>, %arg3: memref<4x4xf32, #tpu.memory_space<vmem>>, %arg4: memref<8x4xf32, #tpu.memory_space<vmem>>, %arg5: memref<4x4xf32, #tpu.memory_space<vmem>>, %arg6: memref<32x4xf32, #tpu.memory_space<vmem>>, %arg7: memref<32x1xf32, #tpu.memory_space<vmem>>, %arg8: memref<32x32xf32, #tpu.memory_space<vmem>>, %arg9: memref<32x1xf32, #tpu.memory_space<vmem>>, %arg10: memref<1x32xf32, #tpu.memory_space<vmem>>, %arg11: memref<1x1xf32, #tpu.memory_space<vmem>>, %arg12: memref<9x128xf32, #tpu.memory_space<vmem>>, %arg13: memref<4x256xf32, #tpu.memory_space<vmem>>) attributes {dimension_semantics = [#tpu.dimension_semantics<parallel>], iteration_bounds = array<i64: 1>, scalar_prefetch = 0 : i64, scratch_operands = 1 : i64, tpu.core_type = #tpu.core_type<tc>, window_params = [{transform_indices = @transform_0, window_bounds = array<i64: 4, 128>}, {pipeline_mode = #tpu.pipeline_mode<synchronous>, transform_indices = @transform_1, window_bounds = array<i64: 8, 4>}, {pipeline_mode = #tpu.pipeline_mode<synchronous>, transform_indices = @transform_2, window_bounds = array<i64: 4, 4>}, {pipeline_mode = #tpu.pipeline_mode<synchronous>, transform_indices = @transform_3, window_bounds = array<i64: 8, 4>}, {pipeline_mode = #tpu.pipeline_mode<synchronous>, transform_indices = @transform_4, window_bounds = array<i64: 4, 4>}, {pipeline_mode = #tpu.pipeline_mode<synchronous>, transform_indices = @transform_5, window_bounds = array<i64: 32, 4>}, {pipeline_mode = #tpu.pipeline_mode<synchronous>, transform_indices = @transform_6, window_bounds = array<i64: 32, 1>}, {pipeline_mode = #tpu.pipeline_mode<synchronous>, transform_indices = @transform_7, window_bounds = array<i64: 32, 32>}, {pipeline_mode = #tpu.pipeline_mode<synchronous>, transform_indices = @transform_8, window_bounds = array<i64: 32, 1>}, {pipeline_mode = #tpu.pipeline_mode<synchronous>, transform_indices = @transform_9, window_bounds = array<i64: 1, 32>}, {pipeline_mode = #tpu.pipeline_mode<synchronous>, transform_indices = @transform_10, window_bounds = array<i64: 1, 1>}, {transform_indices = @transform_11, window_bounds = array<i64: 9, 128>}]} {
    %c0 = arith.constant 0 : index
    %c0_0 = arith.constant 0 : index
    %0 = vector.load %arg1[%c0, %c0_0] : memref<4x128xf32, #tpu.memory_space<vmem>>, vector<4x128xf32>
    %c0_1 = arith.constant 0 : index
    %c0_2 = arith.constant 0 : index
    %1 = vector.load %arg2[%c0_1, %c0_2] : memref<8x4xf32, #tpu.memory_space<vmem>>, vector<8x4xf32>
    %cst = arith.constant dense<0.000000e+00> : vector<8x128xf32>
    %2 = tpu.matmul %1, %0, %cst {dimension_numbers = #tpu.dot_dimension_numbers<[1], [0], [0], [1], [0, 0, 1, 1], [], []>} : vector<8x4xf32>, vector<4x128xf32>, vector<8x128xf32> -> vector<8x128xf32>
    %3 = vector.extract_strided_slice %2 {offsets = [0, 0], sizes = [4, 128], strides = [1, 1]} : vector<8x128xf32> to vector<4x128xf32>
    %4 = math.sin %3 : vector<4x128xf32>
    %5 = math.cos %3 : vector<4x128xf32>
    %6 = vector.extract_strided_slice %2 {offsets = [4, 0], sizes = [4, 128], strides = [1, 1]} : vector<8x128xf32> to vector<4x128xf32>
    %c0_3 = arith.constant 0 : index
    %c0_4 = arith.constant 0 : index
    %7 = vector.load %arg3[%c0_3, %c0_4] : memref<4x4xf32, #tpu.memory_space<vmem>>, vector<4x4xf32>
    %cst_5 = arith.constant dense<0.000000e+00> : vector<4x128xf32>
    %8 = tpu.matmul %7, %4, %cst_5 {dimension_numbers = #tpu.dot_dimension_numbers<[1], [0], [0], [1], [0, 0, 1, 1], [], []>} : vector<4x4xf32>, vector<4x128xf32>, vector<4x128xf32> -> vector<4x128xf32>
    %9 = arith.addf %6, %8 : vector<4x128xf32>
    %c0_6 = arith.constant 0 : index
    %c0_7 = arith.constant 0 : index
    %10 = vector.load %arg13[%c0_6, %c0_7] : memref<4x256xf32, #tpu.memory_space<vmem>>, vector<4x128xf32>
    tpu.vector_store %arg13[%c0_6, %c0_7], %0 {strides = array<i32>} : memref<4x256xf32, #tpu.memory_space<vmem>>, vector<4x128xf32>,
    %c0_8 = arith.constant 0 : index
    %c128 = arith.constant 128 : index
    %11 = vector.load %arg13[%c0_8, %c128] : memref<4x256xf32, #tpu.memory_space<vmem>>, vector<4x128xf32>
    tpu.vector_store %arg13[%c0_8, %c128], %9 {strides = array<i32>} : memref<4x256xf32, #tpu.memory_space<vmem>>, vector<4x128xf32>,
    %c0_9 = arith.constant 0 : index
    %c0_10 = arith.constant 0 : index
    %12 = vector.load %arg13[%c0_9, %c0_10] : memref<4x256xf32, #tpu.memory_space<vmem>>, vector<4x256xf32>
    %c0_11 = arith.constant 0 : index
    %c0_12 = arith.constant 0 : index
    %13 = vector.load %arg6[%c0_11, %c0_12] : memref<32x4xf32, #tpu.memory_space<vmem>>, vector<32x4xf32>
    %cst_13 = arith.constant dense<0.000000e+00> : vector<32x256xf32>
    %14 = tpu.matmul %13, %12, %cst_13 {dimension_numbers = #tpu.dot_dimension_numbers<[1], [0], [0], [1], [0, 0, 1, 1], [], []>} : vector<32x4xf32>, vector<4x256xf32>, vector<32x256xf32> -> vector<32x256xf32>
    %c0_14 = arith.constant 0 : index
    %c0_15 = arith.constant 0 : index
    %15 = vector.load %arg7[%c0_14, %c0_15] : memref<32x1xf32, #tpu.memory_space<vmem>>, vector<32x1xf32>
    %16 = vector.broadcast %15 : vector<32x1xf32> to vector<32x256xf32>
    %17 = arith.addf %14, %16 : vector<32x256xf32>
    %18 = math.tanh %17 : vector<32x256xf32>
    %c0_16 = arith.constant 0 : index
    %c0_17 = arith.constant 0 : index
    %19 = vector.load %arg8[%c0_16, %c0_17] : memref<32x32xf32, #tpu.memory_space<vmem>>, vector<32x32xf32>
    %cst_18 = arith.constant dense<0.000000e+00> : vector<32x256xf32>
    %20 = tpu.matmul %19, %18, %cst_18 {dimension_numbers = #tpu.dot_dimension_numbers<[1], [0], [0], [1], [0, 0, 1, 1], [], []>} : vector<32x32xf32>, vector<32x256xf32>, vector<32x256xf32> -> vector<32x256xf32>
    %c0_19 = arith.constant 0 : index
    %c0_20 = arith.constant 0 : index
    %21 = vector.load %arg9[%c0_19, %c0_20] : memref<32x1xf32, #tpu.memory_space<vmem>>, vector<32x1xf32>
    %22 = vector.broadcast %21 : vector<32x1xf32> to vector<32x256xf32>
    %23 = arith.addf %20, %22 : vector<32x256xf32>
    %24 = math.tanh %23 : vector<32x256xf32>
    %c0_21 = arith.constant 0 : index
    %c0_22 = arith.constant 0 : index
    %25 = vector.load %arg10[%c0_21, %c0_22] : memref<1x32xf32, #tpu.memory_space<vmem>>, vector<1x32xf32>
    %cst_23 = arith.constant dense<0.000000e+00> : vector<1x256xf32>
    %26 = tpu.matmul %25, %24, %cst_23 {dimension_numbers = #tpu.dot_dimension_numbers<[1], [0], [0], [1], [0, 0, 1, 1], [], []>} : vector<1x32xf32>, vector<32x256xf32>, vector<1x256xf32> -> vector<1x256xf32>
    %c0_24 = arith.constant 0 : index
    %c0_25 = arith.constant 0 : index
    %27 = vector.load %arg11[%c0_24, %c0_25] : memref<1x1xf32, #tpu.memory_space<vmem>>, vector<1x1xf32>
    %28 = vector.broadcast %27 : vector<1x1xf32> to vector<1x256xf32>
    %29 = arith.addf %26, %28 : vector<1x256xf32>
    %c0_26 = arith.constant 0 : index
    %c0_27 = arith.constant 0 : index
    %30 = vector.load %arg5[%c0_26, %c0_27] : memref<4x4xf32, #tpu.memory_space<vmem>>, vector<4x4xf32>
    %cst_28 = arith.constant dense<0.000000e+00> : vector<4x256xf32>
    %31 = tpu.matmul %30, %12, %cst_28 {dimension_numbers = #tpu.dot_dimension_numbers<[1], [0], [0], [1], [0, 0, 1, 1], [], []>} : vector<4x4xf32>, vector<4x256xf32>, vector<4x256xf32> -> vector<4x256xf32>
    %32 = arith.mulf %12, %31 : vector<4x256xf32>
    %cst_29 = arith.constant dense<0.000000e+00> : vector<256xf32>
    %33 = vector.multi_reduction <add>, %32, %cst_29 [0] : vector<4x256xf32> to vector<256xf32>
    %34 = vector.shape_cast %33 : vector<256xf32> to vector<1x256xf32>
    %cst_30 = arith.constant 1.000000e+00 : f32
    %35 = vector.broadcast %cst_30 : f32 to vector<4x128xf32>
    %36 = arith.subf %35, %5 : vector<4x128xf32>
    %c0_31 = arith.constant 0 : index
    %c0_32 = arith.constant 0 : index
    %37 = vector.load %arg4[%c0_31, %c0_32] : memref<8x4xf32, #tpu.memory_space<vmem>>, vector<8x4xf32>
    %cst_33 = arith.constant dense<0.000000e+00> : vector<8x128xf32>
    %38 = tpu.matmul %37, %36, %cst_33 {dimension_numbers = #tpu.dot_dimension_numbers<[1], [0], [0], [1], [0, 0, 1, 1], [], []>} : vector<8x4xf32>, vector<4x128xf32>, vector<8x128xf32> -> vector<8x128xf32>
    %39 = vector.extract_strided_slice %38 {offsets = [0, 0], sizes = [4, 128], strides = [1, 1]} : vector<8x128xf32> to vector<4x128xf32>
    %40 = vector.extract_strided_slice %38 {offsets = [4, 0], sizes = [4, 128], strides = [1, 1]} : vector<8x128xf32> to vector<4x128xf32>
    %41 = arith.mulf %39, %39 : vector<4x128xf32>
    %cst_34 = arith.constant dense<0.000000e+00> : vector<128xf32>
    %42 = vector.multi_reduction <add>, %41, %cst_34 [0] : vector<4x128xf32> to vector<128xf32>
    %43 = vector.shape_cast %42 : vector<128xf32> to vector<1x128xf32>
    %44 = arith.mulf %39, %40 : vector<4x128xf32>
    %cst_35 = arith.constant dense<0.000000e+00> : vector<128xf32>
    %45 = vector.multi_reduction <add>, %44, %cst_35 [0] : vector<4x128xf32> to vector<128xf32>
    %46 = vector.shape_cast %45 : vector<128xf32> to vector<1x128xf32>
    %47 = math.sqrt %46 : vector<1x128xf32>
    %cst_36 = arith.constant 2.000000e+00 : f32
    %48 = vector.broadcast %cst_36 : f32 to vector<1x128xf32>
    %49 = arith.mulf %48, %47 : vector<1x128xf32>
    %cst_37 = arith.constant 10.7743273 : f32
    %50 = vector.broadcast %cst_37 : f32 to vector<1x128xf32>
    %51 = arith.mulf %50, %43 : vector<1x128xf32>
    %52 = arith.addf %49, %51 : vector<1x128xf32>
    %cst_38 = arith.constant 0.725596964 : f32
    %53 = vector.broadcast %cst_38 : f32 to vector<1x128xf32>
    %54 = arith.subf %53, %52 : vector<1x128xf32>
    %55 = vector.extract_strided_slice %29 {offsets = [0, 0], sizes = [1, 128], strides = [1, 1]} : vector<1x256xf32> to vector<1x128xf32>
    %56 = vector.extract_strided_slice %29 {offsets = [0, 128], sizes = [1, 128], strides = [1, 1]} : vector<1x256xf32> to vector<1x128xf32>
    %57 = vector.extract_strided_slice %34 {offsets = [0, 0], sizes = [1, 128], strides = [1, 1]} : vector<1x256xf32> to vector<1x128xf32>
    %58 = vector.extract_strided_slice %34 {offsets = [0, 128], sizes = [1, 128], strides = [1, 1]} : vector<1x256xf32> to vector<1x128xf32>
    %59 = arith.subf %56, %55 : vector<1x128xf32>
    %c0_39 = arith.constant 0 : index
    %c0_40 = arith.constant 0 : index
    %60 = vector.load %arg12[%c0_39, %c0_40] : memref<9x128xf32, #tpu.memory_space<vmem>>, vector<1x128xf32>
    tpu.vector_store %arg12[%c0_39, %c0_40], %59 {strides = array<i32>} : memref<9x128xf32, #tpu.memory_space<vmem>>, vector<1x128xf32>,
    %c1 = arith.constant 1 : index
    %c0_41 = arith.constant 0 : index
    %61 = vector.load %arg12[%c1, %c0_41] : memref<9x128xf32, #tpu.memory_space<vmem>>, vector<1x128xf32>
    tpu.vector_store %arg12[%c1, %c0_41], %55 {strides = array<i32>} : memref<9x128xf32, #tpu.memory_space<vmem>>, vector<1x128xf32>,
    %c2 = arith.constant 2 : index
    %c0_42 = arith.constant 0 : index
    %62 = vector.load %arg12[%c2, %c0_42] : memref<9x128xf32, #tpu.memory_space<vmem>>, vector<1x128xf32>
    tpu.vector_store %arg12[%c2, %c0_42], %57 {strides = array<i32>} : memref<9x128xf32, #tpu.memory_space<vmem>>, vector<1x128xf32>,
    %63 = arith.subf %58, %57 : vector<1x128xf32>
    %c3 = arith.constant 3 : index
    %c0_43 = arith.constant 0 : index
    %64 = vector.load %arg12[%c3, %c0_43] : memref<9x128xf32, #tpu.memory_space<vmem>>, vector<1x128xf32>
    tpu.vector_store %arg12[%c3, %c0_43], %63 {strides = array<i32>} : memref<9x128xf32, #tpu.memory_space<vmem>>, vector<1x128xf32>,
    %c4 = arith.constant 4 : index
    %c0_44 = arith.constant 0 : index
    %65 = vector.load %arg12[%c4, %c0_44] : memref<9x128xf32, #tpu.memory_space<vmem>>, vector<1x128xf32>
    tpu.vector_store %arg12[%c4, %c0_44], %54 {strides = array<i32>} : memref<9x128xf32, #tpu.memory_space<vmem>>, vector<1x128xf32>,
    %c5 = arith.constant 5 : index
    %c0_45 = arith.constant 0 : index
    %66 = vector.load %arg12[%c5, %c0_45] : memref<9x128xf32, #tpu.memory_space<vmem>>, vector<4x128xf32>
    tpu.vector_store %arg12[%c5, %c0_45], %9 {strides = array<i32>} : memref<9x128xf32, #tpu.memory_space<vmem>>, vector<4x128xf32>,
    return
  }
  func.func @transform_0(%arg0: i32) -> (i32, i32) {
    %c0_i32 = arith.constant 0 : i32
    %c0_i32_0 = arith.constant 0 : i32
    return %c0_i32, %arg0 : i32, i32
  }
  func.func @transform_1(%arg0: i32) -> (i32, i32) {
    %c0_i32 = arith.constant 0 : i32
    %c0_i32_0 = arith.constant 0 : i32
    %c0_i32_1 = arith.constant 0 : i32
    return %c0_i32, %c0_i32_0 : i32, i32
  }
  func.func @transform_2(%arg0: i32) -> (i32, i32) {
    %c0_i32 = arith.constant 0 : i32
    %c0_i32_0 = arith.constant 0 : i32
    %c0_i32_1 = arith.constant 0 : i32
    return %c0_i32, %c0_i32_0 : i32, i32
  }
  func.func @transform_3(%arg0: i32) -> (i32, i32) {
    %c0_i32 = arith.constant 0 : i32
    %c0_i32_0 = arith.constant 0 : i32
    %c0_i32_1 = arith.constant 0 : i32
    return %c0_i32, %c0_i32_0 : i32, i32
  }
  func.func @transform_4(%arg0: i32) -> (i32, i32) {
    %c0_i32 = arith.constant 0 : i32
    %c0_i32_0 = arith.constant 0 : i32
    %c0_i32_1 = arith.constant 0 : i32
    return %c0_i32, %c0_i32_0 : i32, i32
  }
  func.func @transform_5(%arg0: i32) -> (i32, i32) {
    %c0_i32 = arith.constant 0 : i32
    %c0_i32_0 = arith.constant 0 : i32
    %c0_i32_1 = arith.constant 0 : i32
    return %c0_i32, %c0_i32_0 : i32, i32
  }
  func.func @transform_6(%arg0: i32) -> (i32, i32) {
    %c0_i32 = arith.constant 0 : i32
    %c0_i32_0 = arith.constant 0 : i32
    %c0_i32_1 = arith.constant 0 : i32
    return %c0_i32, %c0_i32_0 : i32, i32
  }
  func.func @transform_7(%arg0: i32) -> (i32, i32) {
    %c0_i32 = arith.constant 0 : i32
    %c0_i32_0 = arith.constant 0 : i32
    %c0_i32_1 = arith.constant 0 : i32
    return %c0_i32, %c0_i32_0 : i32, i32
  }
  func.func @transform_8(%arg0: i32) -> (i32, i32) {
    %c0_i32 = arith.constant 0 : i32
    %c0_i32_0 = arith.constant 0 : i32
    %c0_i32_1 = arith.constant 0 : i32
    return %c0_i32, %c0_i32_0 : i32, i32
  }
  func.func @transform_9(%arg0: i32) -> (i32, i32) {
    %c0_i32 = arith.constant 0 : i32
    %c0_i32_0 = arith.constant 0 : i32
    %c0_i32_1 = arith.constant 0 : i32
    return %c0_i32, %c0_i32_0 : i32, i32
  }
  func.func @transform_10(%arg0: i32) -> (i32, i32) {
    %c0_i32 = arith.constant 0 : i32
    %c0_i32_0 = arith.constant 0 : i32
    %c0_i32_1 = arith.constant 0 : i32
    return %c0_i32, %c0_i32_0 : i32, i32
  }
  func.func @transform_11(%arg0: i32) -> (i32, i32) {
    %c0_i32 = arith.constant 0 : i32
    %c0_i32_0 = arith.constant 0 : i32
    return %c0_i32, %arg0 : i32, i32
  }
}

</mosaic_0001>

<bundles_post_ra>
// kernel: _lambda_.1
= control target key start
LH: loop header
LB: loop body
LE: loop exit
PB: predicated region body
PF: predicated region fallthrough
CT: control target
= control target key end

     0   :  { %s1541_s0 = inlined_call_operand.vmem [shape: f32[4,128], index: 0, kind: input, shape index: {}]   ;;  %s1542_s1 = inlined_call_operand.vmem [shape: f32[8,4], index: 1, kind: input, shape index: {}]   ;;  %s1543_s2 = inlined_call_operand.vmem [shape: f32[4,4], index: 2, kind: input, shape index: {}]   ;;  %s1544_s3 = inlined_call_operand.vmem [shape: f32[8,4], index: 3, kind: input, shape index: {}]   ;;  %s1545_s4 = inlined_call_operand.vmem [shape: f32[4,4], index: 4, kind: input, shape index: {}]   ;;  %s1546_s5 = inlined_call_operand.hbm [shape: f32[32,4], index: 5, kind: input, shape index: {}]   ;;  %s1547_s6 = inlined_call_operand.hbm [shape: f32[32,1], index: 6, kind: input, shape index: {}]   ;;  %s1548_s7 = inlined_call_operand.hbm [shape: f32[32,32], index: 7, kind: input, shape index: {}]   ;;  %s1549_s8 = inlined_call_operand.hbm [shape: f32[32,1], index: 8, kind: input, shape index: {}]   ;;  %s1550_s9 = inlined_call_operand.vmem [shape: f32[1,32], index: 9, kind: input, shape index: {}]   ;;  %s1551_s10 = inlined_call_operand.<no memory space> [shape: f32[1,1], index: 10, kind: input, shape index: {}]   ;;  %s1552_s11 = inlined_call_operand.vmem [shape: f32[9,128], index: 11, kind: output, shape index: {}]  }
   0x1   :  { %v16_v0 = vstv %s1551_s10 }
   0x2   :  { %17 = vst [vmem:[#allocation3] sm:$0x1] %v16_v0 }
   0x3   :  { %18 = vsyncpa [#allocation5], 0 }
   0x4   :  { %19 = vsyncpa [#allocation7], 0 }
   0x5   :  { %20 = vsyncpa [#allocation10], 0  ;;  %s1274_s19 = smov [#allocation6]   ;;  %s1275_s21 = smov [#allocation4]  }
   0x6   :  { %s48_s20 = sshll.u32 %s1274_s19, 4  ;;  %s36_s22 = sshll.u32 %s1275_s21, 4  ;;  %s49_s20 = int_to_ptr.vmem [resolvable:$true] %s48_s20  ;;  %s1352_s22 = int_to_ptr.vmem [resolvable:$true] %s36_s22 }
   0x7   :  { %s1180_s25 = scalar_lea.hbm %s1547_s6, 512 }
   0x8   :  { %p1181_p0 = scmp.ne.s32.totalorder %s1547_s6, %s1180_s25  ;;  %p1184_p1 = scmp.lt.u32.totalorder %s1180_s25, %s1547_s6 }
   0xa   :  { %p1186_p2 = pnand %p1184_p1, %p1181_p0 }
   0xc   :  { %1189 = shalt.err (!%p1186_p2)
}
   0xd   :  { %s1190_s29 = scalar_lea.vmem %s49_s20, 512  ;;  %p1195_p4 = scmp.lt.s32.totalorder %s49_s20, %s49_s20 }
   0xe   :  { %p1191_p3 = scmp.ne.s32.totalorder %s49_s20, %s1190_s29  ;;  %p1196_p5 = scmp.lt.s32.totalorder %s1190_s29, %s1190_s29 }
  0x10   :  { %p1197_p6 = por %p1196_p5, %p1195_p4 }
  0x12   :  { %p1198_p7 = pnand %p1197_p6, %p1191_p3 }
  0x14   :  { %1201 = shalt.err (!%p1198_p7)
}
  0x15   :  { %s1276_s30 = smov 128   ;;  %s1277_s12 = smov 8  }
  0x16   :  { %54 = dma.hbm_to_vmem [thread:$0]  %s1547_s6, 512, %s49_s20, [#allocation7], %s1276_s30, %s1276_s30, %s1277_s12  }
  0x17   :  { %s1202_s17 = scalar_lea.hbm %s1546_s5, 512 }
  0x18   :  { %p1203_p8 = scmp.ne.s32.totalorder %s1546_s5, %s1202_s17  ;;  %p1206_p9 = scmp.lt.u32.totalorder %s1202_s17, %s1546_s5 }
  0x1a   :  { %p1208_p10 = pnand %p1206_p9, %p1203_p8 }
  0x1c   :  { %1211 = shalt.err (!%p1208_p10)
}
  0x1d   :  { %s1212_s24 = scalar_lea.vmem %s1352_s22, 512  ;;  %p1217_p12 = scmp.lt.s32.totalorder %s1352_s22, %s1352_s22 }
  0x1e   :  { %p1213_p11 = scmp.ne.s32.totalorder %s1352_s22, %s1212_s24  ;;  %p1218_p13 = scmp.lt.s32.totalorder %s1212_s24, %s1212_s24 }
  0x20   :  { %p1219_p0 = por %p1218_p13, %p1217_p12 }
  0x22   :  { %p1220_p1 = pnand %p1219_p0, %p1213_p11 }
  0x24   :  { %1223 = shalt.err (!%p1220_p1)
}
  0x25   :  { %42 = dma.hbm_to_vmem [thread:$0]  %s1546_s5, 512, %s1352_s22, [#allocation5], %s1276_s30, %s1276_s30, %s1277_s12  }
  0x26   :  { %s1278_s25 = smov [#allocation8]   ;;  %s1279_s27 = smov [#allocation9]  }
  0x27   :  { %s60_s26 = sshll.u32 %s1278_s25, 4  ;;  %s72_s10 = sshll.u32 %s1279_s27, 4  ;;  %s61_s26 = int_to_ptr.vmem [resolvable:$true] %s60_s26  ;;  %s1389_s10 = int_to_ptr.vmem [resolvable:$true] %s72_s10 }
  0x28   :  { %s1224_s13 = scalar_lea.hbm %s1548_s7, 512 }
  0x29   :  { %p1225_p2 = scmp.ne.s32.totalorder %s1548_s7, %s1224_s13  ;;  %p1228_p3 = scmp.lt.u32.totalorder %s1224_s13, %s1548_s7 }
  0x2b   :  { %p1230_p4 = pnand %p1228_p3, %p1225_p2 }
  0x2d   :  { %1233 = shalt.err (!%p1230_p4)
}
  0x2e   :  { %s1234_s5 = scalar_lea.vmem %s61_s26, 512  ;;  %p1239_p6 = scmp.lt.s32.totalorder %s61_s26, %s61_s26 }
  0x2f   :  { %p1235_p5 = scmp.ne.s32.totalorder %s61_s26, %s1234_s5  ;;  %p1240_p7 = scmp.lt.s32.totalorder %s1234_s5, %s1234_s5 }
  0x31   :  { %p1241_p8 = por %p1240_p7, %p1239_p6 }
  0x33   :  { %p1242_p9 = pnand %p1241_p8, %p1235_p5 }
  0x35   :  { %1245 = shalt.err (!%p1242_p9)
}
  0x36   :  { %66 = dma.hbm_to_vmem [thread:$0]  %s1548_s7, 512, %s61_s26, [#allocation7], %s1276_s30, %s1276_s30, %s1277_s12  }
  0x37   :  { %s1246_s23 = scalar_lea.hbm %s1549_s8, 512 }
  0x38   :  { %p1247_p10 = scmp.ne.s32.totalorder %s1549_s8, %s1246_s23  ;;  %p1250_p11 = scmp.lt.u32.totalorder %s1246_s23, %s1549_s8 }
  0x3a   :  { %p1252_p12 = pnand %p1250_p11, %p1247_p10 }
  0x3c   :  { %1255 = shalt.err (!%p1252_p12)
}
  0x3d   :  { %s1256_s27 = scalar_lea.vmem %s1389_s10, 512  ;;  %p1261_p0 = scmp.lt.s32.totalorder %s1389_s10, %s1389_s10 }
  0x3e   :  { %p1257_p13 = scmp.ne.s32.totalorder %s1389_s10, %s1256_s27  ;;  %p1262_p1 = scmp.lt.s32.totalorder %s1256_s27, %s1256_s27 }
  0x40   :  { %p1263_p2 = por %p1262_p1, %p1261_p0 }
  0x42   :  { %p1264_p3 = pnand %p1263_p2, %p1257_p13 }
  0x44   :  { %1267 = shalt.err (!%p1264_p3)
}
  0x45   :  { %78 = dma.hbm_to_vmem [thread:$0]  %s1549_s8, 512, %s1389_s10, [#allocation10], %s1276_s30, %s1276_s30, %s1277_s12  }
  0x46   :  { %1268 = dma.done.wait [#allocation5], 512  }
  0x47   :  { %1269 = vsyncadd [#allocation5], 4294966784 }
  0x48   :  { %1270 = dma.done.wait [#allocation7], 1024  }
  0x49   :  { %1271 = vsyncadd [#allocation7], 4294966272 }
  0x4a   :  { %1272 = dma.done.wait [#allocation10], 512  }
  0x4b   :  { %1273 = vsyncadd [#allocation10], 4294966784  ;;  %v1280_v1 = vmov 0.0   ;;  %vm1281_vm0 = vmmov 0   ;;  %vm101_vm1 = vcmask 1043456   ;;  %vm97_vm2 = vcmask 31744  }
  0x4c   :  { %1089 = vmatprep.subr.mxu0 %v1280_v1  ;;  %1091 = vmatprep.mubr.msk.f32.mxu0 %vm1281_vm0, %v1280_v1  ;;  %v95_v2 = vld [vmem:[%s1541_s0] sm:$0xf]  ;;  %v1282_v16 = vmov 683565275   ;;  %v1283_v18 = vmov 2475754826  }
  0x4d   :  { %1094 = vmatprep.subr.mxu1 %v1280_v1  ;;  %1096 = vmatprep.mubr.msk.f32.mxu1 %vm1281_vm0, %v1280_v1  ;;  %v96_v3 = vld [vmem:[%s1542_s1] sm:$0xff]  ;;  %463 = vst [vmem:[#allocation2] sm:$0xf] %v95_v2  ;;  %v1284_v21 = vmov 2131351028  }
  0x4e   :  { %1090 = vmatpush3.msk.msra.mxu0 %vm101_vm1, %v95_v2  ;;  %v1285_v24 = vmov 2102212464   ;;  %v1286_v27 = vmov 920167782   ;;  %v1287_v30 = vmov 1326507024  }
  0x4f   :  { %1092 = vmatmul.mubr.msk.f32.vlgmr.msra.gmra.mrb[0].mxu0 %vm97_vm2, %v96_v3 }
  0x50   :  { %579 = vmatprep.mubr.f32.mxu0 %v1280_v1 }
 0x122   :  { %v1441_v4 = vpop.f32.mrb[0].mxu0 }
 0x123   :  { %v178_v5 = vand.u32 2139095040, %v1441_v4  ;;  %v1093_v6 = vpop.f32.mrb[1].mxu0  ;;  %v175_v10 = vand.u32 2147483647, %v1441_v4  ;;  %vm177_vm10 = vcmp.lt.s32.totalorder %v1441_v4, 0 }
 0x125   :  { %v179_v7 = vshrl.u32 %v178_v5, 23  ;;  %v182_v13 = vand.u32 8388607, %v175_v10  ;;  %vm176_vm11 = vcmp.le.f32.partialorder %v175_v10, 0.7853982 }
 0x127   :  { %v1057_v8 = vadd.s32 4294967169, %v179_v7  ;;  %v183_v32 = vor.u32 8388608, %v182_v13 }
 0x129   :  { %v185_v9 = vadd.s32 1, %v1057_v8  ;;  %v223_v46 = vshll.u32 %v183_v32, 8 }
 0x12b   :  { %vm186_vm3 = vcmp.gt.s32.totalorder %v185_v9, 0 }
 0x12c   :  { %v187_v11 = vsel %vm186_vm3, %v185_v9, 0 }
 0x12d   :  { %v189_v12 = vand.u32 31, %v187_v11  ;;  %v188_v15 = vshrl.u32 %v187_v11, 5 }
 0x12f   :  { %v190_v14 = vsub.s32 32, %v189_v12  ;;  %v192_v17 = vshll.u32 %v1282_v16, %v189_v12  ;;  %v195_v19 = vshll.u32 %v1283_v18, %v189_v12  ;;  %v198_v23 = vshll.u32 %v1284_v21, %v189_v12 }
 0x130   :  { %v201_v26 = vshll.u32 %v1285_v24, %v189_v12  ;;  %v204_v29 = vshll.u32 %v1286_v27, %v189_v12  ;;  %vm207_vm4 = vcmp.lt.s32.totalorder %v188_v15, 1  ;;  %vm210_vm5 = vcmp.lt.s32.totalorder %v188_v15, 4 }
 0x131   :  { %v193_v20 = vshrl.u32 %v1283_v18, %v190_v14  ;;  %v196_v22 = vshrl.u32 %v1284_v21, %v190_v14  ;;  %v199_v25 = vshrl.u32 %v1285_v24, %v190_v14  ;;  %v202_v28 = vshrl.u32 %v1286_v27, %v190_v14 }
 0x132   :  { %v205_v31 = vshrl.u32 %v1287_v30, %v190_v14  ;;  %v191_v41 = vshrl.u32 %v1282_v16, %v190_v14  ;;  %vm209_vm6 = vcmp.lt.s32.totalorder %v188_v15, 3  ;;  %vm208_vm7 = vcmp.lt.s32.totalorder %v188_v15, 2 }
 0x133   :  { %v194_v33 = vor.u32 %v193_v20, %v192_v17  ;;  %v197_v34 = vor.u32 %v196_v22, %v195_v19  ;;  %v200_v35 = vor.u32 %v199_v25, %v198_v23  ;;  %v203_v36 = vor.u32 %v202_v28, %v201_v26 }
 0x134   :  { %v206_v37 = vor.u32 %v205_v31, %v204_v29 }
 0x135   :  { %v212_v38 = vsel %vm210_vm5, %v200_v35, 2102212464  ;;  %v215_v39 = vsel %vm207_vm4, %v194_v33, %v197_v34  ;;  %v219_v40 = vsel %vm207_vm4, %v197_v34, %v200_v35  ;;  %v216_v42 = vsel %vm210_vm5, %v203_v36, 920167782 }
 0x136   :  { %v220_v43 = vsel %vm210_vm5, %v206_v37, 1326507024  ;;  %v217_v44 = vsel %vm209_vm6, %v200_v35, %v216_v42  ;;  %v211_v47 = vsel %vm207_vm4, %v191_v41, %v194_v33  ;;  %v213_v48 = vsel %vm209_vm6, %v197_v34, %v212_v38  ;;  %v382_v38 = vld [vmem:[%s1543_s2] sm:$0xf]  ;;  %v475_v42 = vld [vmem:[#allocation6 + $0x10] sm:$0xff] }
 0x137   :  { %v221_v45 = vsel %vm209_vm6, %v203_v36, %v220_v43  ;;  %v218_v49 = vsel %vm208_vm7, %v215_v39, %v217_v44  ;;  %v214_v55 = vsel %vm208_vm7, %v211_v47, %v213_v48  ;;  %vm267_vm5 = vweird.f32 %v1441_v4  ;;  %v473_v41 = vld [vmem:[#allocation6] sm:$0xff]  ;;  %v474_v44 = vld [vmem:[#allocation6 + $0x8] sm:$0xff]  ;;  %v618_v48 = vld [vmem:[#allocation9 + $0x10] sm:$0xff] }
 0x138   :  { %v222_v50 = vsel %vm208_vm7, %v219_v40, %v221_v45  ;;  %v1450_v53 = vmul.u32.u64.low %v223_v46, %v218_v49  ;;  %v1451_v54 = vmul.u32.u64.high %v223_v46, %v218_v49, %v1450_v53  ;;  %v230_v57 = vmul.u32 %v223_v46, %v214_v55  ;;  %v476_v45 = vld [vmem:[#allocation6 + $0x18] sm:$0xff]  ;;  %v617_v47 = vld [vmem:[#allocation9 + $0x8] sm:$0xff] }
 0x139   :  { %v1447_v51 = vmul.u32.u64.low %v223_v46, %v222_v50  ;;  %v1448_v52 = vmul.u32.u64.high %v223_v46, %v222_v50, %v1447_v51  ;;  %v1288_v43 = vmov 0   ;;  %v616_v46 = vld [vmem:[#allocation9] sm:$0xff]  ;;  %v619_v49 = vld [vmem:[#allocation9 + $0x18] sm:$0xff]  ;;  %vm640_vm6 = vcmask 261120  }
 0x13a   :  { %v233_v56 = vadd.s32 1, %v1451_v54  ;;  %1139 = vset.pattern.permute.xlu0 %v1288_v43  ;;  %1140 = vset.pattern.permute.xlu1 %v1288_v43  ;;  %v751_v50 = vld [vmem:[#allocation3] sm:$0x1] }
 0x13b   :  { %vm232_vm8 = vc.u32 %v1448_v52, %v1450_v53  ;;  %v231_v7 = vadd.s32 %v1450_v53, %v1448_v52  ;;  %479 = vperm.xlu0 %1139, %v473_v41   ;;  %489 = vperm.xlu1 %1140, %v475_v42  }
 0x13c   :  { %v234_v58 = vsel %vm232_vm8, %v233_v56, %v1451_v54 }
 0x13d   :  { %v235_v59 = vadd.s32 %v234_v58, %v230_v57  ;;  %v469_v58 = vld [vmem:[#allocation4] sm:$0xff] }
 0x13f   :  { %v236_v60 = vadd.s32 536870912, %v235_v59  ;;  %484 = vperm.xlu0 %1139, %v474_v44   ;;  %494 = vperm.xlu1 %1140, %v476_v45  }
 0x141   :  { %v237_v61 = vshrl.u32 %v236_v60, 30  ;;  %v472_v60 = vld [vmem:[#allocation4 + $0x18] sm:$0xff] }
 0x143   :  { %v238_v62 = vshll.u32 %v237_v61, 30  ;;  %v261_v20 = vsub.s32 4, %v237_v61  ;;  %622 = vperm.xlu0 %1139, %v616_v46   ;;  %627 = vperm.xlu1 %1140, %v617_v47  }
 0x145   :  { %v239_v63 = vsub.s32 %v235_v59, %v238_v62  ;;  %v262_v23 = vsel %vm177_vm10, %v261_v20, %v237_v61  ;;  %v471_v59 = vld [vmem:[#allocation4 + $0x10] sm:$0xff] }
 0x146   :  { %v264_v25 = vsel %vm176_vm11, 0, %v262_v23 }
 0x147   :  { %v241_v0 = vsub.s32 0, %v239_v63  ;;  %v268_v26 = vadd.s32 3, %v264_v25  ;;  %v372_v28 = vand.u32 3, %v264_v25  ;;  %632 = vperm.xlu0 %1139, %v618_v48   ;;  %637 = vperm.xlu1 %1140, %v619_v49  }
 0x149   :  { %v1058_v2 = vmin.u32 %v241_v0, %v239_v63  ;;  %v269_v27 = vand.u32 3, %v268_v26  ;;  %vm377_vm13 = vcmp.eq.s32.totalorder %v372_v28, 2  ;;  %vm374_vm15 = vcmp.eq.s32.totalorder %v372_v28, 0 }
 0x14a   :  { %vm373_vm4 = vcmp.lt.s32.totalorder %v372_v28, 2 }
 0x14b   :  { %v243_v3 = vclz %v1058_v2  ;;  %vm274_vm12 = vcmp.eq.s32.totalorder %v269_v27, 2  ;;  %vm271_vm14 = vcmp.eq.s32.totalorder %v269_v27, 0  ;;  %vm270_vm3 = vcmp.lt.s32.totalorder %v269_v27, 2  ;;  %754 = vperm.xlu0 %1139, %v751_v50  }
 0x14d   :  { %v1059_v5 = vadd.s32 4294967294, %v243_v3 }
 0x14f   :  { %vm1060_vm9 = vcmp.lt.s32.totalorder %v1059_v5, 0 }
 0x150   :  { %v246_v6 = vsel %vm1060_vm9, 0, %v1059_v5 }
 0x151   :  { %v247_v8 = vsub.s32 32, %v246_v6  ;;  %v251_v9 = vsub.s32 4294967266, %v246_v6  ;;  %v248_v11 = vshll.u32 %v239_v63, %v246_v6 }
 0x153   :  { %v249_v12 = vshrl.u32 %v231_v7, %v247_v8  ;;  %v252_v13 = vadd.s32 127, %v251_v9 }
 0x155   :  { %v250_v14 = vor.u32 %v249_v12, %v248_v11  ;;  %v253_v15 = vshll.u32 %v252_v13, 23 }
 0x157   :  { %v254_v16 = vor.u32 4788187, %v253_v15  ;;  %v257_v18 = vcvt.s32.f32 %v250_v14 }
 0x159   :  { %v255_v17 = vand.u32 2147483647, %v254_v16 }
 0x15b   :  { %v258_v19 = vmul.f32 %v257_v18, %v255_v17 }
 0x15d   :  { %v259_v21 = vxor.u32 2147483648, %v258_v19 }
 0x15f   :  { %v260_v22 = vsel %vm177_vm10, %v259_v21, %v258_v19 }
 0x160   :  { %v263_v24 = vsel %vm176_vm11, %v1441_v4, %v260_v22 }
 0x161   :  { %1142 = vcosq.f32 %v263_v24 }
 0x162   :  { %1144 = vsinq.f32 %v263_v24 }
 0x16b   :  { %v1143_v29 = vpop.eup %1142 }
 0x16c   :  { %v1145_v30 = vpop.eup %1144  ;;  %v275_v31 = vxor.u32 2147483648, %v1143_v29 }
 0x16d   :  { %v272_v32 = vxor.u32 2147483648, %v1145_v30 }
 0x16e   :  { %v276_v33 = vsel %vm274_vm12, %v275_v31, %v1145_v30  ;;  %v379_v10 = vsel %vm377_vm13, %v275_v31, %v1145_v30 }
 0x16f   :  { %v273_v34 = vsel %vm271_vm14, %v1143_v29, %v272_v32  ;;  %v376_v35 = vsel %vm374_vm15, %v1143_v29, %v272_v32  ;;  %v612_v32 = vld [vmem:[#allocation8] sm:$0xff] }
 0x170   :  { %v277_v36 = vsel %vm270_vm3, %v273_v34, %v276_v33  ;;  %v380_v37 = vsel %vm373_vm4, %v376_v35, %v379_v10  ;;  %v613_v10 = vld [vmem:[#allocation8 + $0x8] sm:$0xff]  ;;  %v614_v34 = vld [vmem:[#allocation8 + $0x10] sm:$0xff]  ;;  %v615_v35 = vld [vmem:[#allocation8 + $0x18] sm:$0xff] }
 0x171   :  { %v278_v39 = vsel %vm267_vm5, nan, %v277_v36  ;;  %v1465_v40 = vsel %vm267_vm5, nan, %v380_v37  ;;  %v933_v36 = vld [vmem:[%s1544_s3] sm:$0xff] }
 0x172   :  { %1095 = vmatpush3.msk.msra.mxu1 %vm101_vm1, %v278_v39  ;;  %v932_v33 = vsub.f32 1.0, %v1465_v40 }
 0x173   :  { %1097 = vmatmul.mubr.msk.f32.vlgmr.msra.gmra.mrb[0].mxu1 %vm97_vm2, %v382_v38 }
 0x174   :  { %717 = vmatprep.mubr.f32.mxu1 %v1280_v1 }
 0x1ba   :  { %v480_v61 = vpop.permute.xlu0 %479  ;;  %v490_v8 = vpop.permute.xlu1 %489 }
 0x1be   :  { %v485_v3 = vpop.permute.xlu0 %484  ;;  %v495_v15 = vpop.permute.xlu1 %494 }
 0x1c2   :  { %v623_v37 = vpop.permute.xlu0 %622  ;;  %v628_v42 = vpop.permute.xlu1 %627 }
 0x1c6   :  { %v633_v47 = vpop.permute.xlu0 %632 }
 0x246   :  { %v455_v51 = vpop.f32.mrb[0].mxu1 }
 0x247   :  { %v460_v52 = vrot.slane %v455_v51, 4  ;;  %v1098_v53 = vpop.f32.mrb[1].mxu1 }
 0x249   :  { %v462_v54 = vadd.f32 %v460_v52, %v1441_v4  ;;  %v470_v4 = vld [vmem:[#allocation4 + $0x8] sm:$0xff]  ;;  %v638_v52 = vpop.permute.xlu1 %637 }
 0x24b   :  { %v465_v55 = vcombine.high %v462_v54, %v462_v54  ;;  %1047 = vst [vmem:[%s1552_s11 + $0x1] sm:$0xf0] %v462_v54 }
 0x24d   :  { %467 = vst [vmem:[#allocation2 + $0x4] sm:$0xf] %v465_v55 }
 0x254   :  { %v1474_v56 = vld [vmem:[#allocation2] sm:$0xff] }
 0x255   :  { %v1478_v57 = vcombine.high %v1474_v56, %v1474_v56 }
 0x257   :  { %1067 = vmatprep.subr.msk.mxu0 %vm101_vm1, %v1478_v57 }
 0x258   :  { %1068 = vmatpush1.msk.msra.mxu0 %vm101_vm1, %v1474_v56 }
 0x259   :  { %1069 = vmatmul.mubr.msk.f32.vlgmr.msra.gmra.mrb[2].mxu0 %vm97_vm2, %v469_v58 }
 0x25a   :  { %585 = vmatprep.mubr.f32.mxu0 %v1280_v1 }
 0x25d   :  { %1070 = vmatmul.mubr.msk.f32.gmra.mrb[4].mxu0 %vm97_vm2, %v470_v4 }
 0x25e   :  { %591 = vmatprep.mubr.f32.mxu0 %v1280_v1 }
 0x261   :  { %1071 = vmatmul.mubr.msk.f32.gmra.mrb[6].mxu0 %vm97_vm2, %v471_v59 }
 0x262   :  { %597 = vmatprep.mubr.f32.mxu0 %v1280_v1 }
 0x265   :  { %1072 = vmatmul.mubr.msk.f32.gmra.mrb[8].mxu0 %vm97_vm2, %v472_v60 }
 0x266   :  { %828 = vmatprep.mubr.f32.mxu0 %v1280_v1 }
 0x32c   :  { %v581_v62 = vpop.f32.mrb[2].mxu0 }
 0x32d   :  { %v582_v63 = vadd.f32 %v581_v62, %v480_v61  ;;  %v583_v0 = vpop.f32.mrb[3].mxu0 }
 0x32e   :  { %v584_v2 = vadd.f32 %v583_v0, %v480_v61 }
 0x32f   :  { %1146 = vtanh.f32 %v582_v63 }
 0x330   :  { %v587_v5 = vpop.f32.mrb[4].mxu0  ;;  %1148 = vtanh.f32 %v584_v2 }
 0x331   :  { %v588_v6 = vadd.f32 %v587_v5, %v485_v3  ;;  %v589_v7 = vpop.f32.mrb[5].mxu0 }
 0x332   :  { %v590_v9 = vadd.f32 %v589_v7, %v485_v3 }
 0x333   :  { %1150 = vtanh.f32 %v588_v6 }
 0x334   :  { %1152 = vtanh.f32 %v590_v9  ;;  %v593_v11 = vpop.f32.mrb[6].mxu0  ;;  %v835_v9 = vld [vmem:[%s1545_s4] sm:$0xf] }
 0x335   :  { %v594_v12 = vadd.f32 %v593_v11, %v490_v8  ;;  %v595_v13 = vpop.f32.mrb[7].mxu0 }
 0x336   :  { %v596_v14 = vadd.f32 %v595_v13, %v490_v8  ;;  %v750_v8 = vld [vmem:[%s1550_s9] sm:$0x1] }
 0x337   :  { %1154 = vtanh.f32 %v594_v12 }
 0x338   :  { %v599_v16 = vpop.f32.mrb[8].mxu0  ;;  %1156 = vtanh.f32 %v596_v14 }
 0x339   :  { %v600_v17 = vadd.f32 %v599_v16, %v495_v15  ;;  %v601_v18 = vpop.f32.mrb[9].mxu0  ;;  %v1147_v20 = vpop.eup %1146 }
 0x33a   :  { %v602_v19 = vadd.f32 %v601_v18, %v495_v15  ;;  %v1149_v21 = vpop.eup %1148 }
 0x33b   :  { %1158 = vtanh.f32 %v600_v17 }
 0x33c   :  { %1160 = vtanh.f32 %v602_v19 }
 0x33d   :  { %v1151_v22 = vpop.eup %1150 }
 0x33e   :  { %v1153_v23 = vpop.eup %1152  ;;  %v1106_v24 = vpack.c.bf16 %v1151_v22, %v1147_v20 }
 0x33f   :  { %v1104_v25 = vpack.c.bf16 %v1153_v23, %v1149_v21 }
 0x341   :  { %1105 = vmatprep.subr.bf16.mxu1 %v1104_v25  ;;  %v1155_v26 = vpop.eup %1154 }
 0x342   :  { %1107 = vmatpush1.bf16.msra.mxu1 %v1106_v24  ;;  %v1157_v27 = vpop.eup %1156 }
 0x345   :  { %v1159_v28 = vpop.eup %1158 }
 0x346   :  { %v1161_v29 = vpop.eup %1160  ;;  %v1110_v30 = vpack.c.bf16 %v1159_v28, %v1155_v26 }
 0x347   :  { %v1108_v31 = vpack.c.bf16 %v1161_v29, %v1157_v27 }
 0x349   :  { %1109 = vmatprep.subr.bf16.mxu1 %v1108_v31 }
 0x34a   :  { %1111 = vmatpush1.bf16.msra.mxu1 %v1110_v30 }
 0x34b   :  { %1099 = vmatprep.subr.mxu1 %v1280_v1 }
 0x34d   :  { %1073 = vmatmul.mubr.msk.f32.vlgmr.msra.gmra.mrb[2].mxu1 %vm640_vm6, %v612_v32 }
 0x34e   :  { %1100 = vmatpush3.msk.msra.mxu1 %vm101_vm1, %v932_v33  ;;  %723 = vmatprep.mubr.f32.mxu1 %v1280_v1 }
 0x351   :  { %1074 = vmatmul.mubr.msk.f32.gmra.mrb[4].mxu1 %vm640_vm6, %v613_v10 }
 0x352   :  { %729 = vmatprep.mubr.f32.mxu1 %v1280_v1 }
 0x355   :  { %1075 = vmatmul.mubr.msk.f32.gmra.mrb[6].mxu1 %vm640_vm6, %v614_v34 }
 0x356   :  { %735 = vmatprep.mubr.f32.mxu1 %v1280_v1 }
 0x359   :  { %1076 = vmatmul.mubr.msk.f32.gmra.mrb[8].mxu1 %vm640_vm6, %v615_v35 }
 0x35a   :  { %1101 = vmatprep.mubr.msk.f32.mxu1 %vm1281_vm0, %v1280_v1 }
 0x35d   :  { %1102 = vmatmul.mubr.msk.f32.vlgmr.msra.gmra.mrb[10].mxu1 %vm97_vm2, %v933_v36  ;;  %v757_v36 = vlaneseq }
 0x420   :  { %v719_v38 = vpop.f32.mrb[2].mxu1 }
 0x421   :  { %v720_v39 = vadd.f32 %v719_v38, %v623_v37  ;;  %v721_v40 = vpop.f32.mrb[3].mxu1 }
 0x422   :  { %v722_v41 = vadd.f32 %v721_v40, %v623_v37  ;;  %v758_v37 = vshrl.u32 %v757_v36, 7 }
 0x423   :  { %1162 = vtanh.f32 %v720_v39  ;;  %v755_v39 = vpop.permute.xlu0 %754 }
 0x424   :  { %v725_v43 = vpop.f32.mrb[4].mxu1  ;;  %1164 = vtanh.f32 %v722_v41  ;;  %v759_v38 = vsub.s32 0, %v758_v37 }
 0x425   :  { %v726_v44 = vadd.f32 %v725_v43, %v628_v42  ;;  %v727_v45 = vpop.f32.mrb[5].mxu1 }
 0x426   :  { %v728_v46 = vadd.f32 %v727_v45, %v628_v42  ;;  %v760_v40 = vrot.slane %v755_v39, %v759_v38 }
 0x427   :  { %1166 = vtanh.f32 %v726_v44 }
 0x428   :  { %1168 = vtanh.f32 %v728_v46  ;;  %v731_v48 = vpop.f32.mrb[6].mxu1 }
 0x429   :  { %v732_v49 = vadd.f32 %v731_v48, %v633_v47  ;;  %v733_v50 = vpop.f32.mrb[7].mxu1 }
 0x42a   :  { %v734_v51 = vadd.f32 %v733_v50, %v633_v47 }
 0x42b   :  { %1170 = vtanh.f32 %v732_v49 }
 0x42c   :  { %v737_v53 = vpop.f32.mrb[8].mxu1  ;;  %1172 = vtanh.f32 %v734_v51 }
 0x42d   :  { %v738_v54 = vadd.f32 %v737_v53, %v638_v52  ;;  %v739_v55 = vpop.f32.mrb[9].mxu1  ;;  %v1163_v4 = vpop.eup %1162 }
 0x42e   :  { %v740_v58 = vadd.f32 %v739_v55, %v638_v52  ;;  %v1165_v59 = vpop.eup %1164 }
 0x42f   :  { %1174 = vtanh.f32 %v738_v54 }
 0x430   :  { %1176 = vtanh.f32 %v740_v58  ;;  %v1006_v11 = vpop.f32.mrb[10].mxu1 }
 0x431   :  { %v1167_v60 = vpop.eup %1166  ;;  %v1010_v12 = vmul.f32 %v1006_v11, %v1006_v11  ;;  %v1019_v13 = vrot.slane %v1006_v11, 4  ;;  %v1103_v14 = vpop.f32.mrb[11].mxu1 }
 0x432   :  { %v1169_v61 = vpop.eup %1168  ;;  %v1114_v62 = vpack.c.bf16 %v1167_v60, %v1163_v4 }
 0x433   :  { %v1112_v63 = vpack.c.bf16 %v1169_v61, %v1165_v59  ;;  %v1021_v15 = vmul.f32 %v1019_v13, %v1006_v11 }
 0x435   :  { %1113 = vmatprep.subr.bf16.mxu0 %v1112_v63  ;;  %v1171_v0 = vpop.eup %1170  ;;  %v1022_v16 = vsel %vm101_vm1, %v1021_v15, 0.0 }
 0x436   :  { %1115 = vmatpush1.bf16.msra.mxu0 %v1114_v62  ;;  %v1173_v2 = vpop.eup %1172  ;;  %v1023_v17 = vrot.slane %v1022_v16, 4 }
 0x438   :  { %v1024_v19 = vadd.f32 %v1023_v17, %v1022_v16 }
 0x439   :  { %v1175_v3 = vpop.eup %1174 }
 0x43a   :  { %v1177_v5 = vpop.eup %1176  ;;  %v1118_v6 = vpack.c.bf16 %v1175_v3, %v1171_v0  ;;  %v1025_v20 = vrot.slane %v1024_v19, 2 }
 0x43b   :  { %v1116_v7 = vpack.c.bf16 %v1177_v5, %v1173_v2 }
 0x43c   :  { %v1026_v21 = vadd.f32 %v1025_v20, %v1024_v19 }
 0x43d   :  { %1117 = vmatprep.subr.bf16.mxu0 %v1116_v7 }
 0x43e   :  { %1119 = vmatpush1.bf16.msra.mxu0 %v1118_v6  ;;  %v1027_v22 = vrot.slane %v1026_v21, 1 }
 0x43f   :  { %1078 = vmatprep.subr.msk.mxu0 %vm101_vm1, %v1478_v57  ;;  %v1011_v57 = vsel %vm101_vm1, %v1010_v12, 0.0 }
 0x440   :  { %v1012_v18 = vrot.slane %v1011_v57, 4  ;;  %v1028_v24 = vadd.f32 %v1027_v22, %v1026_v21 }
 0x441   :  { %1077 = vmatmul.mubr.msk.f32.vlgmr.msra.gmra.mrb[10].mxu0 %vm640_vm6, %v750_v8 }
 0x442   :  { %1079 = vmatpush1.msk.msra.mxu0 %vm101_vm1, %v1474_v56  ;;  %903 = vmatprep.mubr.f32.mxu0 %v1280_v1  ;;  %v1013_v1 = vadd.f32 %v1012_v18, %v1011_v57  ;;  %1178 = vrsqrt.f32 %v1028_v24  ;;  %vm1031_vm0 = vcmp.eq.f32.partialorder %v1028_v24, inf  ;;  %v1034_v29 = vand.u32 2147483648, %v1028_v24 }
 0x444   :  { %v1014_v23 = vrot.slane %v1013_v1, 2 }
 0x445   :  { %1080 = vmatmul.mubr.msk.f32.vlgmr.msra.gmra.mrb[12].mxu0 %vm97_vm2, %v835_v9  ;;  %vm1033_vm2 = vcmp.eq.f32.partialorder %v1028_v24, 0.0 }
 0x446   :  { %v1015_v25 = vadd.f32 %v1014_v23, %v1013_v1 }
 0x448   :  { %v1016_v26 = vrot.slane %v1015_v25, 1 }
 0x44a   :  { %v1017_v27 = vadd.f32 %v1016_v26, %v1015_v25 }
 0x44c   :  { %v1179_v28 = vpop.eup %1178  ;;  %v1037_v32 = vmul.f32 10.774327, %v1017_v27 }
 0x44d   :  { %v1030_v30 = vmul.f32 %v1179_v28, %v1028_v24 }
 0x44f   :  { %v1032_v31 = vsel %vm1031_vm0, %v1028_v24, %v1030_v30 }
 0x450   :  { %v1035_v33 = vsel %vm1033_vm2, %v1034_v29, %v1032_v31 }
 0x451   :  { %v1036_v10 = vmul.f32 2.0, %v1035_v33 }
 0x453   :  { %v1038_v34 = vadd.f32 %v1037_v32, %v1036_v10 }
 0x455   :  { %v1039_v35 = vsub.f32 0.72559696, %v1038_v34 }
 0x457   :  { %1046 = vst [vmem:[%s1552_s11 + $0x4] sm:$0x1] %v1039_v35 }
 0x514   :  { %v830_v41 = vpop.f32.mrb[10].mxu0 }
 0x515   :  { %v831_v42 = vadd.f32 %v830_v41, %v760_v40  ;;  %v832_v43 = vpop.f32.mrb[11].mxu0 }
 0x516   :  { %v833_v44 = vadd.f32 %v832_v43, %v760_v40 }
 0x517   :  { %1042 = vst [vmem:[%s1552_s11 + $0x1] sm:$0x1] %v831_v42 }
 0x518   :  { %v1040_v45 = vsub.f32 %v833_v44, %v831_v42  ;;  %v905_v46 = vpop.f32.mrb[12].mxu0 }
 0x519   :  { %v907_v47 = vpop.f32.mrb[13].mxu0 }
 0x51a   :  { %1041 = vst [vmem:[%s1552_s11] sm:$0x1] %v1040_v45  ;;  %v912_v48 = vcombine.low %v905_v46, %v907_v47 }
 0x51c   :  { %v914_v49 = vmul.f32 %v912_v48, %v1474_v56 }
 0x51e   :  { %v916_v50 = vcombine.high %v914_v49, %v914_v49  ;;  %v918_v51 = vsel %vm101_vm1, %v914_v49, 0.0 }
 0x51f   :  { %v919_v52 = vrot.slane %v918_v51, 4 }
 0x520   :  { %v925_v53 = vsel %vm101_vm1, %v916_v50, 0.0 }
 0x521   :  { %v920_v54 = vadd.f32 %v919_v52, %v918_v51  ;;  %v926_v55 = vrot.slane %v925_v53, 4 }
 0x523   :  { %v921_v58 = vrot.slane %v920_v54, 2  ;;  %v927_v4 = vadd.f32 %v926_v55, %v925_v53 }
 0x525   :  { %v922_v59 = vadd.f32 %v921_v58, %v920_v54  ;;  %v928_v60 = vrot.slane %v927_v4, 2 }
 0x527   :  { %v923_v61 = vrot.slane %v922_v59, 1  ;;  %v929_v62 = vadd.f32 %v928_v60, %v927_v4 }
 0x529   :  { %v924_v63 = vadd.f32 %v923_v61, %v922_v59  ;;  %v930_v0 = vrot.slane %v929_v62, 1 }
 0x52b   :  { %v931_v2 = vadd.f32 %v930_v0, %v929_v62  ;;  %1043 = vst [vmem:[%s1552_s11 + $0x2] sm:$0x1] %v924_v63 }
 0x52d   :  { %v1044_v56 = vsub.f32 %v931_v2, %v924_v63 }
 0x52f   :  { %1045 = vst [vmem:[%s1552_s11 + $0x3] sm:$0x1] %v1044_v56 }
 0x530   :  { %1052 = vsyncpa [#allocation5], 1 }
 0x531   :  { %1053 = vsyncpa [#allocation7], 1 }
 0x532   :  { %1054 = vsyncpa [#allocation10], 1 }

</bundles_post_ra>
